<compile_context>
chip_gen: v5e
topology: v5e:2x2
jax: 0.10.0
libtpu: 0.0.40
codegen_flags: <defaults>
</compile_context>

<pallas_src>
import functools
import math

import jax
import jax.numpy as jnp
from jax.experimental import pallas as pl
from jax.experimental.pallas import tpu as pltpu


# ----------------------------------------------------------------------------
# Pallas kernel: one ResidualAttentionBlock forward for TB batch elements.
# ----------------------------------------------------------------------------
def _block_kernel(x_ref, mask_ref,
                  g1_ref, b1_ref,
                  wqkv_ref, bqkv_ref,
                  wo_ref, bo_ref,
                  g2_ref, b2_ref,
                  wfc_ref, bfc_ref,
                  wpr_ref, bpr_ref,
                  o_ref,
                  ctx_ref,
                  *, n_head, eps):
    tb, S, D = x_ref.shape
    hd = D // n_head
    M = tb * S
    xdt = x_ref.dtype

    x = x_ref[...].reshape(M, D)                      # (TB*S, D), leading-dim merge

    def layernorm(v, g, b):
        # LayerNorm subclass semantics: compute in fp32, cast back to orig dtype.
        vf = v.astype(jnp.float32)
        mu = jnp.mean(vf, axis=-1, keepdims=True)
        var = jnp.mean(jnp.square(vf - mu), axis=-1, keepdims=True)
        normed = (vf - mu) * jax.lax.rsqrt(var + eps)
        return (normed * g + b).astype(v.dtype)

    # ---- attention branch: attn(ln_1(x)) ------------------------------------
    h = layernorm(x, g1_ref[...], b1_ref[...])                          # (M, D) x.dtype
    qkv = jnp.dot(h, wqkv_ref[...],
                  preferred_element_type=jnp.float32) + bqkv_ref[...]   # (M, 3D) fp32

    # 1/sqrt(head_dim) already folded into the Q columns of w_qkv / b_qkv.
    # Cast MXU operands to x.dtype once (fp32 accumulation stays in the einsum).
    q = qkv[:, 0 * D:1 * D].astype(xdt)
    k = qkv[:, 1 * D:2 * D].astype(xdt)
    v = qkv[:, 2 * D:3 * D].astype(xdt)

    # Hoisted mask load / broadcast (shared by every head).
    mask = jnp.broadcast_to(mask_ref[...].astype(jnp.float32)[None], (tb, S, S))

    for hh in range(n_head):               # static unroll over heads
        lo, hi = hh * hd, (hh + 1) * hd
        qh = q[:, lo:hi].reshape(tb, S, hd)     # leading-dim split (layout-trivial)
        kh = k[:, lo:hi].reshape(tb, S, hd)
        vh = v[:, lo:hi].reshape(tb, S, hd)
        # Scores: batched over TB, contraction on head_dim (no explicit kh.T).
        s = jnp.einsum('bqd,bkd->bqk', qh, kh,
                       preferred_element_type=jnp.float32) + mask       # (tb,S,S) fp32
        m = jnp.max(s, axis=-1, keepdims=True)
        p = jnp.exp(s - m)
        l = jnp.sum(p, axis=-1, keepdims=True)
        c = jnp.einsum('bqk,bkd->bqd', p.astype(xdt), vh,
                       preferred_element_type=jnp.float32)              # (tb,S,hd)
        # Fold 1/sum into the (smaller) PV output; EUP approximate reciprocal.
        c = c * pl.reciprocal(l, approx=True)
        # Assemble context in an x.dtype VMEM scratch instead of a lane concat.
        ctx_ref[:, lo:hi] = c.reshape(M, hd).astype(ctx_ref.dtype)

    attn = jnp.dot(ctx_ref[...], wo_ref[...],
                   preferred_element_type=jnp.float32) + bo_ref[...]    # (M, D) fp32
    x1 = x + attn.astype(xdt)                                           # residual 1

    # ---- MLP branch: mlp(ln_2(x)) --------------------------------------------
    h2 = layernorm(x1, g2_ref[...], b2_ref[...])
    fc = jnp.dot(h2, wfc_ref[...],
                 preferred_element_type=jnp.float32) + bfc_ref[...]     # (M, 4D) fp32
    # QuickGELU in x.dtype so the c_proj matmul gets a native-dtype LHS
    # (bf16 VPU/EUP on v6e/v7x; identical math in fp32 on fp32 inputs).
    fcx = fc.astype(xdt)
    ge = fcx * jax.nn.sigmoid(1.702 * fcx)
    mlp = jnp.dot(ge, wpr_ref[...],
                  preferred_element_type=jnp.float32) + bpr_ref[...]    # (M, D) fp32

    y = x1 + mlp.astype(xdt)                                            # residual 2
    o_ref[...] = y.reshape(tb, S, D).astype(o_ref.dtype)


# ----------------------------------------------------------------------------
# Wrapper
# ----------------------------------------------------------------------------
def residual_attention_block(x, mask, params, n_head):
    bs0, S0, D = x.shape
    assert D % n_head == 0
    hd = D // n_head
    xdt = x.dtype

    # --- hardware query (generation-aware tiling / VMEM budget) --------------
    try:
        vmem_cap = int(pltpu.get_tpu_info().vmem_capacity_bytes)
    except Exception:
        vmem_cap = 64 * 1024 * 1024          # conservative (v7x-sized) fallback

    # Pad the sequence dim to the next sublane multiple only (80 for S0=77) so
    # in-kernel reshapes are layout-trivial.  Do NOT pad to 128: it adds ~60%
    # more rows through every dense matmul for zero MXU benefit.  Padded keys
    # are masked out for real queries; padded query rows get an all-zero mask
    # row (no NaNs) and are sliced off below.
    S = ((S0 + 7) // 8) * 8
    if S != S0:
        x = jnp.pad(x, ((0, 0), (0, S - S0), (0, 0)))
        mask = jnp.pad(mask, ((0, S - S0), (0, S - S0)), constant_values=-1e9)
        mask = mask.at[S0:, :].set(0.0)

    # --- TB selection: fill the MXU M-dim, never fall back to tb=1 -----------
    # 128 MiB parts (v5e/v6e) can afford tb up to 8; 64 MiB parts (v7x) cap at 4.
    tb_max = 4 if vmem_cap <= (64 * 1024 * 1024) else 8
    tb = max(1, min(tb_max, bs0))
    # v7x: prefer >=2 grid steps so the 'parallel' axis shards across both TCs.
    if vmem_cap <= (64 * 1024 * 1024) and tb >= 4 and pl.cdiv(bs0, tb) < 2:
        tb = max(2, tb // 2)
    # Pad the batch up to a multiple of tb (cheaper than shrinking tb to 1).
    bs = pl.cdiv(bs0, tb) * tb
    if bs != bs0:
        x = jnp.pad(x, ((0, bs - bs0), (0, 0), (0, 0)))
    grid = (bs // tb,)

    # --- parameter prep --------------------------------------------------------
    # Fold 1/sqrt(head_dim) into the Q rows of w_qkv / Q segment of b_qkv once,
    # pre-transpose weights so the kernel computes h @ W (PyTorch linear is
    # x @ W.T), and cast matmul weights to x.dtype for native MXU rate.
    scale = 1.0 / math.sqrt(hd)
    w_qkv = params["w_qkv"].astype(jnp.float32)
    b_qkv = params["b_qkv"].astype(jnp.float32)
    w_qkv = w_qkv.at[:D, :].multiply(scale)
    b_qkv = b_qkv.at[:D].multiply(scale)

    args = (
        x,
        mask,
        params["ln1_g"].astype(jnp.float32).reshape(1, D),
        params["ln1_b"].astype(jnp.float32).reshape(1, D),
        w_qkv.T.astype(xdt), b_qkv.reshape(1, 3 * D),
        params["w_out"].T.astype(xdt),
        params["b_out"].astype(jnp.float32).reshape(1, D),
        params["ln2_g"].astype(jnp.float32).reshape(1, D),
        params["ln2_b"].astype(jnp.float32).reshape(1, D),
        params["w_fc"].T.astype(xdt),
        params["b_fc"].astype(jnp.float32).reshape(1, 4 * D),
        params["w_proj"].T.astype(xdt),
        params["b_proj"].astype(jnp.float32).reshape(1, D),
    )

    # --- VMEM budget: single-buffered weights (counted once) + activation -----
    # slabs + double-buffered x/out blocks + ctx scratch + headroom, capped at
    # 80% of the physical per-core VMEM.
    itemsize = x.dtype.itemsize
    weight_bytes = sum(int(a.size) * a.dtype.itemsize for a in args[1:])
    act_bytes = tb * S * 16 * D * 4 + 2 * tb * S * S * 4   # fp32 qkv/fc + s/p slabs
    io_bytes = 2 * 2 * tb * S * D * itemsize               # x & out, double-buffered
    scratch_bytes = tb * S * D * itemsize                  # ctx scratch (x.dtype)
    needed = weight_bytes + act_bytes + io_bytes + scratch_bytes + (4 << 20)
    vmem_limit = int(max(16 << 20, min(needed, int(0.8 * vmem_cap))))

    # --- Cost estimate (advisory, helps XLA schedule around the fused call) ---
    m_total = bs * S
    matmul_flops = 2 * m_total * D * (3 * D + D + 4 * D + 4 * D)
    attn_flops = 4 * bs * S * S * D
    transcendentals = bs * n_head * S * S + m_total * 4 * D
    bytes_accessed = 2 * m_total * D * itemsize + (bs // tb) * weight_bytes
    cost = pl.CostEstimate(flops=int(matmul_flops + attn_flops),
                           transcendentals=int(transcendentals),
                           bytes_accessed=int(bytes_accessed))

    kernel = functools.partial(_block_kernel, n_head=n_head, eps=1e-5)

    def _call(single_buffer_weights):
        def const_spec(shape):
            idx = lambda b, _n=len(shape): (0,) * _n
            if single_buffer_weights:
                try:
                    return pl.BlockSpec(shape, idx, pipeline_mode=pl.Buffered(1))
                except TypeError:
                    pass
            return pl.BlockSpec(shape, idx)

        in_specs = [pl.BlockSpec((tb, S, D), lambda b: (b, 0, 0))]
        in_specs += [const_spec(a.shape) for a in args[1:]]
        out_specs = pl.BlockSpec((tb, S, D), lambda b: (b, 0, 0))

        out = pl.pallas_call(
            kernel,
            out_shape=jax.ShapeDtypeStruct((bs, S, D), x.dtype),
            grid=grid,
            in_specs=in_specs,
            out_specs=out_specs,
            scratch_shapes=[pltpu.VMEM((tb * S, D), xdt)],
            compiler_params=pltpu.CompilerParams(
                dimension_semantics=("parallel",),
                vmem_limit_bytes=vmem_limit),
            cost_estimate=cost,
        )(*args)
        if bs != bs0:
            out = out[:bs0]
        if S != S0:
            out = out[:, :S0, :]
        return out

    # Prefer single-buffered grid-invariant operands; narrow fallback only for
    # builds that reject pipeline_mode / Buffered at lowering time.
    try:
        return _call(True)
    except (TypeError, pltpu.LoweringException):
        return _call(False)


# ----------------------------------------------------------------------------
# Pure-JAX reference (mirrors the PyTorch forward) for correctness check.
# ----------------------------------------------------------------------------
def reference(x, mask, p, n_head):
    bs, S, D = x.shape
    hd = D // n_head
    eps = 1e-5

    def ln(v, g, b):
        vf = v.astype(jnp.float32)
        mu = vf.mean(-1, keepdims=True)
        var = ((vf - mu) ** 2).mean(-1, keepdims=True)
        return ((vf - mu) / jnp.sqrt(var + eps) * g + b).astype(v.dtype)

    h = ln(x, p["ln1_g"], p["ln1_b"])
    qkv = h @ p["w_qkv"].T + p["b_qkv"]                       # (bs, S, 3D)
    qkv = qkv.reshape(bs, S, 3, n_head, hd).transpose(2, 0, 3, 1, 4)
    q, k, v = qkv[0], qkv[1], qkv[2]                          # (bs, H, S, hd)
    s = jnp.einsum("bhqd,bhkd->bhqk", q, k) / math.sqrt(hd) + mask
    a = jax.nn.softmax(s, axis=-1)
    ctx = jnp.einsum("bhqk,bhkd->bhqd", a, v)
    ctx = ctx.transpose(0, 2, 1, 3).reshape(bs, S, D)
    attn = ctx @ p["w_out"].T + p["b_out"]
    x1 = x + attn

    h2 = ln(x1, p["ln2_g"], p["ln2_b"])
    fc = h2 @ p["w_fc"].T + p["b_fc"]
    ge = fc * jax.nn.sigmoid(1.702 * fc)
    mlp = ge @ p["w_proj"].T + p["b_proj"]
    return x1 + mlp


# ----------------------------------------------------------------------------
if __name__ == "__main__":
    bs, S, D, H = 2, 8, 32, 4
    key = jax.random.PRNGKey(0)
    keys = jax.random.split(key, 12)

    params = {
        "ln1_g": jnp.ones((D,), jnp.float32),
        "ln1_b": jnp.zeros((D,), jnp.float32),
        "w_qkv": 0.05 * jax.random.normal(keys[0], (3 * D, D), jnp.float32),
        "b_qkv": 0.05 * jax.random.normal(keys[1], (3 * D,), jnp.float32),
        "w_out": 0.05 * jax.random.normal(keys[2], (D, D), jnp.float32),
        "b_out": 0.05 * jax.random.normal(keys[3], (D,), jnp.float32),
        "ln2_g": jnp.ones((D,), jnp.float32),
        "ln2_b": jnp.zeros((D,), jnp.float32),
        "w_fc": 0.05 * jax.random.normal(keys[4], (4 * D, D), jnp.float32),
        "b_fc": 0.05 * jax.random.normal(keys[5], (4 * D,), jnp.float32),
        "w_proj": 0.05 * jax.random.normal(keys[6], (D, 4 * D), jnp.float32),
        "b_proj": 0.05 * jax.random.normal(keys[7], (D,), jnp.float32),
    }

    x = jax.random.normal(keys[8], (bs, S, D), jnp.float32)

    # CLIP-style causal additive attention mask (large negative above diagonal).
    mask = jnp.triu(jnp.full((S, S), -1e9, jnp.float32), k=1)

    out = residual_attention_block(x, mask, params, n_head=H)
    out = jax.block_until_ready(out)

    ref = reference(x, mask, params, n_head=H)
    assert out.shape == (bs, S, D)
    # Tolerance 1e-3: kernel softmax uses the EUP approximate reciprocal,
    # the reference uses exact division.
    assert jnp.allclose(out, ref, rtol=1e-3, atol=1e-3), (
        float(jnp.max(jnp.abs(out - ref))))

    print("KERNEL_OK")
</pallas_src>

<mosaic_0001>
module attributes {stable_mosaic.version = 11 : i64} {
  func.func @_block_kernel(%arg0: i32, %arg1: memref<2x8x32xf32, #tpu.memory_space<vmem>>, %arg2: memref<8x8xf32, #tpu.memory_space<vmem>>, %arg3: memref<1x32xf32, #tpu.memory_space<vmem>>, %arg4: memref<1x32xf32, #tpu.memory_space<vmem>>, %arg5: memref<32x96xf32, #tpu.memory_space<vmem>>, %arg6: memref<1x96xf32, #tpu.memory_space<vmem>>, %arg7: memref<32x32xf32, #tpu.memory_space<vmem>>, %arg8: memref<1x32xf32, #tpu.memory_space<vmem>>, %arg9: memref<1x32xf32, #tpu.memory_space<vmem>>, %arg10: memref<1x32xf32, #tpu.memory_space<vmem>>, %arg11: memref<32x128xf32, #tpu.memory_space<vmem>>, %arg12: memref<1x128xf32, #tpu.memory_space<vmem>>, %arg13: memref<128x32xf32, #tpu.memory_space<vmem>>, %arg14: memref<1x32xf32, #tpu.memory_space<vmem>>, %arg15: memref<2x8x32xf32, #tpu.memory_space<vmem>>, %arg16: memref<16x32xf32, #tpu.memory_space<vmem>>) attributes {dimension_semantics = [#tpu.dimension_semantics<parallel>], iteration_bounds = array<i64: 1>, scalar_prefetch = 0 : i64, scratch_operands = 1 : i64, tpu.core_type = #tpu.core_type<tc>, window_params = [{transform_indices = @transform_0, window_bounds = array<i64: 2, 8, 32>}, {pipeline_mode = #tpu.pipeline_mode<synchronous>, transform_indices = @transform_1, window_bounds = array<i64: 8, 8>}, {pipeline_mode = #tpu.pipeline_mode<synchronous>, transform_indices = @transform_2, window_bounds = array<i64: 1, 32>}, {pipeline_mode = #tpu.pipeline_mode<synchronous>, transform_indices = @transform_3, window_bounds = array<i64: 1, 32>}, {pipeline_mode = #tpu.pipeline_mode<synchronous>, transform_indices = @transform_4, window_bounds = array<i64: 32, 96>}, {pipeline_mode = #tpu.pipeline_mode<synchronous>, transform_indices = @transform_5, window_bounds = array<i64: 1, 96>}, {pipeline_mode = #tpu.pipeline_mode<synchronous>, transform_indices = @transform_6, window_bounds = array<i64: 32, 32>}, {pipeline_mode = #tpu.pipeline_mode<synchronous>, transform_indices = @transform_7, window_bounds = array<i64: 1, 32>}, {pipeline_mode = #tpu.pipeline_mode<synchronous>, transform_indices = @transform_8, window_bounds = array<i64: 1, 32>}, {pipeline_mode = #tpu.pipeline_mode<synchronous>, transform_indices = @transform_9, window_bounds = array<i64: 1, 32>}, {pipeline_mode = #tpu.pipeline_mode<synchronous>, transform_indices = @transform_10, window_bounds = array<i64: 32, 128>}, {pipeline_mode = #tpu.pipeline_mode<synchronous>, transform_indices = @transform_11, window_bounds = array<i64: 1, 128>}, {pipeline_mode = #tpu.pipeline_mode<synchronous>, transform_indices = @transform_12, window_bounds = array<i64: 128, 32>}, {pipeline_mode = #tpu.pipeline_mode<synchronous>, transform_indices = @transform_13, window_bounds = array<i64: 1, 32>}, {transform_indices = @transform_14, window_bounds = array<i64: 2, 8, 32>}]} {
    %c0 = arith.constant 0 : index
    %c0_0 = arith.constant 0 : index
    %c0_1 = arith.constant 0 : index
    %0 = vector.load %arg1[%c0, %c0_0, %c0_1] : memref<2x8x32xf32, #tpu.memory_space<vmem>>, vector<2x8x32xf32>
    %1 = vector.shape_cast %0 : vector<2x8x32xf32> to vector<16x32xf32>
    %c0_2 = arith.constant 0 : index
    %c0_3 = arith.constant 0 : index
    %2 = vector.load %arg3[%c0_2, %c0_3] : memref<1x32xf32, #tpu.memory_space<vmem>>, vector<1x32xf32>
    %c0_4 = arith.constant 0 : index
    %c0_5 = arith.constant 0 : index
    %3 = vector.load %arg4[%c0_4, %c0_5] : memref<1x32xf32, #tpu.memory_space<vmem>>, vector<1x32xf32>
    %cst = arith.constant dense<0.000000e+00> : vector<16xf32>
    %4 = vector.multi_reduction <add>, %1, %cst [1] : vector<16x32xf32> to vector<16xf32>
    %5 = vector.shape_cast %4 : vector<16xf32> to vector<16x1xf32>
    %cst_6 = arith.constant 3.200000e+01 : f32
    %6 = vector.broadcast %cst_6 : f32 to vector<16x1xf32>
    %7 = arith.divf %5, %6 : vector<16x1xf32>
    %8 = vector.broadcast %7 : vector<16x1xf32> to vector<16x32xf32>
    %9 = arith.subf %1, %8 : vector<16x32xf32>
    %10 = arith.mulf %9, %9 : vector<16x32xf32>
    %cst_7 = arith.constant dense<0.000000e+00> : vector<16xf32>
    %11 = vector.multi_reduction <add>, %10, %cst_7 [1] : vector<16x32xf32> to vector<16xf32>
    %12 = vector.shape_cast %11 : vector<16xf32> to vector<16x1xf32>
    %cst_8 = arith.constant 3.200000e+01 : f32
    %13 = vector.broadcast %cst_8 : f32 to vector<16x1xf32>
    %14 = arith.divf %12, %13 : vector<16x1xf32>
    %15 = vector.broadcast %7 : vector<16x1xf32> to vector<16x32xf32>
    %16 = arith.subf %1, %15 : vector<16x32xf32>
    %cst_9 = arith.constant 9.99999974E-6 : f32
    %17 = vector.broadcast %cst_9 : f32 to vector<16x1xf32>
    %18 = arith.addf %14, %17 : vector<16x1xf32>
    %19 = math.rsqrt %18 : vector<16x1xf32>
    %20 = vector.broadcast %19 : vector<16x1xf32> to vector<16x32xf32>
    %21 = arith.mulf %16, %20 : vector<16x32xf32>
    %22 = vector.broadcast %2 : vector<1x32xf32> to vector<16x32xf32>
    %23 = arith.mulf %21, %22 : vector<16x32xf32>
    %24 = vector.broadcast %3 : vector<1x32xf32> to vector<16x32xf32>
    %25 = arith.addf %23, %24 : vector<16x32xf32>
    %c0_10 = arith.constant 0 : index
    %c0_11 = arith.constant 0 : index
    %26 = vector.load %arg5[%c0_10, %c0_11] : memref<32x96xf32, #tpu.memory_space<vmem>>, vector<32x96xf32>
    %cst_12 = arith.constant dense<0.000000e+00> : vector<16x96xf32>
    %27 = tpu.matmul %25, %26, %cst_12 {dimension_numbers = #tpu.dot_dimension_numbers<[1], [0], [0], [1], [0, 0, 1, 1], [], []>} : vector<16x32xf32>, vector<32x96xf32>, vector<16x96xf32> -> vector<16x96xf32>
    %c0_13 = arith.constant 0 : index
    %c0_14 = arith.constant 0 : index
    %28 = vector.load %arg6[%c0_13, %c0_14] : memref<1x96xf32, #tpu.memory_space<vmem>>, vector<1x96xf32>
    %29 = vector.broadcast %28 : vector<1x96xf32> to vector<16x96xf32>
    %30 = arith.addf %27, %29 : vector<16x96xf32>
    %31 = vector.extract_strided_slice %30 {offsets = [0, 0], sizes = [16, 32], strides = [1, 1]} : vector<16x96xf32> to vector<16x32xf32>
    %32 = vector.extract_strided_slice %30 {offsets = [0, 32], sizes = [16, 32], strides = [1, 1]} : vector<16x96xf32> to vector<16x32xf32>
    %33 = vector.extract_strided_slice %30 {offsets = [0, 64], sizes = [16, 32], strides = [1, 1]} : vector<16x96xf32> to vector<16x32xf32>
    %c0_15 = arith.constant 0 : index
    %c0_16 = arith.constant 0 : index
    %34 = vector.load %arg2[%c0_15, %c0_16] : memref<8x8xf32, #tpu.memory_space<vmem>>, vector<8x8xf32>
    %35 = vector.shape_cast %34 : vector<8x8xf32> to vector<1x8x8xf32>
    %36 = vector.shape_cast %35 : vector<1x8x8xf32> to vector<1x8x8xf32>
    %37 = vector.broadcast %36 : vector<1x8x8xf32> to vector<2x8x8xf32>
    %38 = vector.extract_strided_slice %31 {offsets = [0, 0], sizes = [16, 8], strides = [1, 1]} : vector<16x32xf32> to vector<16x8xf32>
    %39 = vector.shape_cast %38 : vector<16x8xf32> to vector<2x8x8xf32>
    %40 = vector.extract_strided_slice %32 {offsets = [0, 0], sizes = [16, 8], strides = [1, 1]} : vector<16x32xf32> to vector<16x8xf32>
    %41 = vector.shape_cast %40 : vector<16x8xf32> to vector<2x8x8xf32>
    %42 = vector.extract_strided_slice %33 {offsets = [0, 0], sizes = [16, 8], strides = [1, 1]} : vector<16x32xf32> to vector<16x8xf32>
    %43 = vector.shape_cast %42 : vector<16x8xf32> to vector<2x8x8xf32>
    "tpu.trace_start"() <{level = 10 : i32, message = "bqd,bkd->bqk"}> : () -> ()
    %cst_17 = arith.constant dense<0.000000e+00> : vector<2x8x8xf32>
    %44 = tpu.matmul %39, %41, %cst_17 {dimension_numbers = #tpu.dot_dimension_numbers<[2], [2], [1], [1], [0, 0, 0, 1, 1, 1], [0], [0]>} : vector<2x8x8xf32>, vector<2x8x8xf32>, vector<2x8x8xf32> -> vector<2x8x8xf32>
    "tpu.trace_stop"() : () -> ()
    %45 = arith.addf %44, %37 : vector<2x8x8xf32>
    %cst_18 = arith.constant dense<0xFF800000> : vector<2x8xf32>
    %46 = vector.multi_reduction <maximumf>, %45, %cst_18 [2] : vector<2x8x8xf32> to vector<2x8xf32>
    %47 = vector.shape_cast %46 : vector<2x8xf32> to vector<2x8x1xf32>
    %48 = vector.broadcast %47 : vector<2x8x1xf32> to vector<2x8x8xf32>
    %49 = arith.subf %45, %48 : vector<2x8x8xf32>
    %50 = math.exp %49 : vector<2x8x8xf32>
    %cst_19 = arith.constant dense<0.000000e+00> : vector<2x8xf32>
    %51 = vector.multi_reduction <add>, %50, %cst_19 [2] : vector<2x8x8xf32> to vector<2x8xf32>
    %52 = vector.shape_cast %51 : vector<2x8xf32> to vector<2x8x1xf32>
    "tpu.trace_start"() <{level = 10 : i32, message = "bqk,bkd->bqd"}> : () -> ()
    %cst_20 = arith.constant dense<0.000000e+00> : vector<2x8x8xf32>
    %53 = tpu.matmul %50, %43, %cst_20 {dimension_numbers = #tpu.dot_dimension_numbers<[2], [1], [1], [2], [0, 0, 0, 1, 1, 2], [0], [0]>} : vector<2x8x8xf32>, vector<2x8x8xf32>, vector<2x8x8xf32> -> vector<2x8x8xf32>
    "tpu.trace_stop"() : () -> ()
    %54 = tpu.reciprocal %52 {approx = true} : vector<2x8x1xf32> -> vector<2x8x1xf32>
    %55 = vector.broadcast %54 : vector<2x8x1xf32> to vector<2x8x8xf32>
    %56 = arith.mulf %53, %55 : vector<2x8x8xf32>
    %57 = vector.shape_cast %56 : vector<2x8x8xf32> to vector<16x8xf32>
    %c0_21 = arith.constant 0 : index
    %c0_22 = arith.constant 0 : index
    %58 = vector.load %arg16[%c0_21, %c0_22] : memref<16x32xf32, #tpu.memory_space<vmem>>, vector<16x8xf32>
    tpu.vector_store %arg16[%c0_21, %c0_22], %57 {strides = array<i32>} : memref<16x32xf32, #tpu.memory_space<vmem>>, vector<16x8xf32>,
    %59 = vector.extract_strided_slice %31 {offsets = [0, 8], sizes = [16, 8], strides = [1, 1]} : vector<16x32xf32> to vector<16x8xf32>
    %60 = vector.shape_cast %59 : vector<16x8xf32> to vector<2x8x8xf32>
    %61 = vector.extract_strided_slice %32 {offsets = [0, 8], sizes = [16, 8], strides = [1, 1]} : vector<16x32xf32> to vector<16x8xf32>
    %62 = vector.shape_cast %61 : vector<16x8xf32> to vector<2x8x8xf32>
    %63 = vector.extract_strided_slice %33 {offsets = [0, 8], sizes = [16, 8], strides = [1, 1]} : vector<16x32xf32> to vector<16x8xf32>
    %64 = vector.shape_cast %63 : vector<16x8xf32> to vector<2x8x8xf32>
    "tpu.trace_start"() <{level = 10 : i32, message = "bqd,bkd->bqk"}> : () -> ()
    %cst_23 = arith.constant dense<0.000000e+00> : vector<2x8x8xf32>
    %65 = tpu.matmul %60, %62, %cst_23 {dimension_numbers = #tpu.dot_dimension_numbers<[2], [2], [1], [1], [0, 0, 0, 1, 1, 1], [0], [0]>} : vector<2x8x8xf32>, vector<2x8x8xf32>, vector<2x8x8xf32> -> vector<2x8x8xf32>
    "tpu.trace_stop"() : () -> ()
    %66 = arith.addf %65, %37 : vector<2x8x8xf32>
    %cst_24 = arith.constant dense<0xFF800000> : vector<2x8xf32>
    %67 = vector.multi_reduction <maximumf>, %66, %cst_24 [2] : vector<2x8x8xf32> to vector<2x8xf32>
    %68 = vector.shape_cast %67 : vector<2x8xf32> to vector<2x8x1xf32>
    %69 = vector.broadcast %68 : vector<2x8x1xf32> to vector<2x8x8xf32>
    %70 = arith.subf %66, %69 : vector<2x8x8xf32>
    %71 = math.exp %70 : vector<2x8x8xf32>
    %cst_25 = arith.constant dense<0.000000e+00> : vector<2x8xf32>
    %72 = vector.multi_reduction <add>, %71, %cst_25 [2] : vector<2x8x8xf32> to vector<2x8xf32>
    %73 = vector.shape_cast %72 : vector<2x8xf32> to vector<2x8x1xf32>
    "tpu.trace_start"() <{level = 10 : i32, message = "bqk,bkd->bqd"}> : () -> ()
    %cst_26 = arith.constant dense<0.000000e+00> : vector<2x8x8xf32>
    %74 = tpu.matmul %71, %64, %cst_26 {dimension_numbers = #tpu.dot_dimension_numbers<[2], [1], [1], [2], [0, 0, 0, 1, 1, 2], [0], [0]>} : vector<2x8x8xf32>, vector<2x8x8xf32>, vector<2x8x8xf32> -> vector<2x8x8xf32>
    "tpu.trace_stop"() : () -> ()
    %75 = tpu.reciprocal %73 {approx = true} : vector<2x8x1xf32> -> vector<2x8x1xf32>
    %76 = vector.broadcast %75 : vector<2x8x1xf32> to vector<2x8x8xf32>
    %77 = arith.mulf %74, %76 : vector<2x8x8xf32>
    %78 = vector.shape_cast %77 : vector<2x8x8xf32> to vector<16x8xf32>
    %c0_27 = arith.constant 0 : index
    %c8 = arith.constant 8 : index
    %79 = vector.load %arg16[%c0_27, %c8] : memref<16x32xf32, #tpu.memory_space<vmem>>, vector<16x8xf32>
    tpu.vector_store %arg16[%c0_27, %c8], %78 {strides = array<i32>} : memref<16x32xf32, #tpu.memory_space<vmem>>, vector<16x8xf32>,
    %80 = vector.extract_strided_slice %31 {offsets = [0, 16], sizes = [16, 8], strides = [1, 1]} : vector<16x32xf32> to vector<16x8xf32>
    %81 = vector.shape_cast %80 : vector<16x8xf32> to vector<2x8x8xf32>
    %82 = vector.extract_strided_slice %32 {offsets = [0, 16], sizes = [16, 8], strides = [1, 1]} : vector<16x32xf32> to vector<16x8xf32>
    %83 = vector.shape_cast %82 : vector<16x8xf32> to vector<2x8x8xf32>
    %84 = vector.extract_strided_slice %33 {offsets = [0, 16], sizes = [16, 8], strides = [1, 1]} : vector<16x32xf32> to vector<16x8xf32>
    %85 = vector.shape_cast %84 : vector<16x8xf32> to vector<2x8x8xf32>
    "tpu.trace_start"() <{level = 10 : i32, message = "bqd,bkd->bqk"}> : () -> ()
    %cst_28 = arith.constant dense<0.000000e+00> : vector<2x8x8xf32>
    %86 = tpu.matmul %81, %83, %cst_28 {dimension_numbers = #tpu.dot_dimension_numbers<[2], [2], [1], [1], [0, 0, 0, 1, 1, 1], [0], [0]>} : vector<2x8x8xf32>, vector<2x8x8xf32>, vector<2x8x8xf32> -> vector<2x8x8xf32>
    "tpu.trace_stop"() : () -> ()
    %87 = arith.addf %86, %37 : vector<2x8x8xf32>
    %cst_29 = arith.constant dense<0xFF800000> : vector<2x8xf32>
    %88 = vector.multi_reduction <maximumf>, %87, %cst_29 [2] : vector<2x8x8xf32> to vector<2x8xf32>
    %89 = vector.shape_cast %88 : vector<2x8xf32> to vector<2x8x1xf32>
    %90 = vector.broadcast %89 : vector<2x8x1xf32> to vector<2x8x8xf32>
    %91 = arith.subf %87, %90 : vector<2x8x8xf32>
    %92 = math.exp %91 : vector<2x8x8xf32>
    %cst_30 = arith.constant dense<0.000000e+00> : vector<2x8xf32>
    %93 = vector.multi_reduction <add>, %92, %cst_30 [2] : vector<2x8x8xf32> to vector<2x8xf32>
    %94 = vector.shape_cast %93 : vector<2x8xf32> to vector<2x8x1xf32>
    "tpu.trace_start"() <{level = 10 : i32, message = "bqk,bkd->bqd"}> : () -> ()
    %cst_31 = arith.constant dense<0.000000e+00> : vector<2x8x8xf32>
    %95 = tpu.matmul %92, %85, %cst_31 {dimension_numbers = #tpu.dot_dimension_numbers<[2], [1], [1], [2], [0, 0, 0, 1, 1, 2], [0], [0]>} : vector<2x8x8xf32>, vector<2x8x8xf32>, vector<2x8x8xf32> -> vector<2x8x8xf32>
    "tpu.trace_stop"() : () -> ()
    %96 = tpu.reciprocal %94 {approx = true} : vector<2x8x1xf32> -> vector<2x8x1xf32>
    %97 = vector.broadcast %96 : vector<2x8x1xf32> to vector<2x8x8xf32>
    %98 = arith.mulf %95, %97 : vector<2x8x8xf32>
    %99 = vector.shape_cast %98 : vector<2x8x8xf32> to vector<16x8xf32>
    %c0_32 = arith.constant 0 : index
    %c16 = arith.constant 16 : index
    %100 = vector.load %arg16[%c0_32, %c16] : memref<16x32xf32, #tpu.memory_space<vmem>>, vector<16x8xf32>
    tpu.vector_store %arg16[%c0_32, %c16], %99 {strides = array<i32>} : memref<16x32xf32, #tpu.memory_space<vmem>>, vector<16x8xf32>,
    %101 = vector.extract_strided_slice %31 {offsets = [0, 24], sizes = [16, 8], strides = [1, 1]} : vector<16x32xf32> to vector<16x8xf32>
    %102 = vector.shape_cast %101 : vector<16x8xf32> to vector<2x8x8xf32>
    %103 = vector.extract_strided_slice %32 {offsets = [0, 24], sizes = [16, 8], strides = [1, 1]} : vector<16x32xf32> to vector<16x8xf32>
    %104 = vector.shape_cast %103 : vector<16x8xf32> to vector<2x8x8xf32>
    %105 = vector.extract_strided_slice %33 {offsets = [0, 24], sizes = [16, 8], strides = [1, 1]} : vector<16x32xf32> to vector<16x8xf32>
    %106 = vector.shape_cast %105 : vector<16x8xf32> to vector<2x8x8xf32>
    "tpu.trace_start"() <{level = 10 : i32, message = "bqd,bkd->bqk"}> : () -> ()
    %cst_33 = arith.constant dense<0.000000e+00> : vector<2x8x8xf32>
    %107 = tpu.matmul %102, %104, %cst_33 {dimension_numbers = #tpu.dot_dimension_numbers<[2], [2], [1], [1], [0, 0, 0, 1, 1, 1], [0], [0]>} : vector<2x8x8xf32>, vector<2x8x8xf32>, vector<2x8x8xf32> -> vector<2x8x8xf32>
    "tpu.trace_stop"() : () -> ()
    %108 = arith.addf %107, %37 : vector<2x8x8xf32>
    %cst_34 = arith.constant dense<0xFF800000> : vector<2x8xf32>
    %109 = vector.multi_reduction <maximumf>, %108, %cst_34 [2] : vector<2x8x8xf32> to vector<2x8xf32>
    %110 = vector.shape_cast %109 : vector<2x8xf32> to vector<2x8x1xf32>
    %111 = vector.broadcast %110 : vector<2x8x1xf32> to vector<2x8x8xf32>
    %112 = arith.subf %108, %111 : vector<2x8x8xf32>
    %113 = math.exp %112 : vector<2x8x8xf32>
    %cst_35 = arith.constant dense<0.000000e+00> : vector<2x8xf32>
    %114 = vector.multi_reduction <add>, %113, %cst_35 [2] : vector<2x8x8xf32> to vector<2x8xf32>
    %115 = vector.shape_cast %114 : vector<2x8xf32> to vector<2x8x1xf32>
    "tpu.trace_start"() <{level = 10 : i32, message = "bqk,bkd->bqd"}> : () -> ()
    %cst_36 = arith.constant dense<0.000000e+00> : vector<2x8x8xf32>
    %116 = tpu.matmul %113, %106, %cst_36 {dimension_numbers = #tpu.dot_dimension_numbers<[2], [1], [1], [2], [0, 0, 0, 1, 1, 2], [0], [0]>} : vector<2x8x8xf32>, vector<2x8x8xf32>, vector<2x8x8xf32> -> vector<2x8x8xf32>
    "tpu.trace_stop"() : () -> ()
    %117 = tpu.reciprocal %115 {approx = true} : vector<2x8x1xf32> -> vector<2x8x1xf32>
    %118 = vector.broadcast %117 : vector<2x8x1xf32> to vector<2x8x8xf32>
    %119 = arith.mulf %116, %118 : vector<2x8x8xf32>
    %120 = vector.shape_cast %119 : vector<2x8x8xf32> to vector<16x8xf32>
    %c0_37 = arith.constant 0 : index
    %c24 = arith.constant 24 : index
    %121 = vector.load %arg16[%c0_37, %c24] : memref<16x32xf32, #tpu.memory_space<vmem>>, vector<16x8xf32>
    tpu.vector_store %arg16[%c0_37, %c24], %120 {strides = array<i32>} : memref<16x32xf32, #tpu.memory_space<vmem>>, vector<16x8xf32>,
    %c0_38 = arith.constant 0 : index
    %c0_39 = arith.constant 0 : index
    %122 = vector.load %arg16[%c0_38, %c0_39] : memref<16x32xf32, #tpu.memory_space<vmem>>, vector<16x32xf32>
    %c0_40 = arith.constant 0 : index
    %c0_41 = arith.constant 0 : index
    %123 = vector.load %arg7[%c0_40, %c0_41] : memref<32x32xf32, #tpu.memory_space<vmem>>, vector<32x32xf32>
    %cst_42 = arith.constant dense<0.000000e+00> : vector<16x32xf32>
    %124 = tpu.matmul %122, %123, %cst_42 {dimension_numbers = #tpu.dot_dimension_numbers<[1], [0], [0], [1], [0, 0, 1, 1], [], []>} : vector<16x32xf32>, vector<32x32xf32>, vector<16x32xf32> -> vector<16x32xf32>
    %c0_43 = arith.constant 0 : index
    %c0_44 = arith.constant 0 : index
    %125 = vector.load %arg8[%c0_43, %c0_44] : memref<1x32xf32, #tpu.memory_space<vmem>>, vector<1x32xf32>
    %126 = vector.broadcast %125 : vector<1x32xf32> to vector<16x32xf32>
    %127 = arith.addf %124, %126 : vector<16x32xf32>
    %128 = arith.addf %1, %127 : vector<16x32xf32>
    %c0_45 = arith.constant 0 : index
    %c0_46 = arith.constant 0 : index
    %129 = vector.load %arg9[%c0_45, %c0_46] : memref<1x32xf32, #tpu.memory_space<vmem>>, vector<1x32xf32>
    %c0_47 = arith.constant 0 : index
    %c0_48 = arith.constant 0 : index
    %130 = vector.load %arg10[%c0_47, %c0_48] : memref<1x32xf32, #tpu.memory_space<vmem>>, vector<1x32xf32>
    %cst_49 = arith.constant dense<0.000000e+00> : vector<16xf32>
    %131 = vector.multi_reduction <add>, %128, %cst_49 [1] : vector<16x32xf32> to vector<16xf32>
    %132 = vector.shape_cast %131 : vector<16xf32> to vector<16x1xf32>
    %cst_50 = arith.constant 3.200000e+01 : f32
    %133 = vector.broadcast %cst_50 : f32 to vector<16x1xf32>
    %134 = arith.divf %132, %133 : vector<16x1xf32>
    %135 = vector.broadcast %134 : vector<16x1xf32> to vector<16x32xf32>
    %136 = arith.subf %128, %135 : vector<16x32xf32>
    %137 = arith.mulf %136, %136 : vector<16x32xf32>
    %cst_51 = arith.constant dense<0.000000e+00> : vector<16xf32>
    %138 = vector.multi_reduction <add>, %137, %cst_51 [1] : vector<16x32xf32> to vector<16xf32>
    %139 = vector.shape_cast %138 : vector<16xf32> to vector<16x1xf32>
    %cst_52 = arith.constant 3.200000e+01 : f32
    %140 = vector.broadcast %cst_52 : f32 to vector<16x1xf32>
    %141 = arith.divf %139, %140 : vector<16x1xf32>
    %142 = vector.broadcast %134 : vector<16x1xf32> to vector<16x32xf32>
    %143 = arith.subf %128, %142 : vector<16x32xf32>
    %cst_53 = arith.constant 9.99999974E-6 : f32
    %144 = vector.broadcast %cst_53 : f32 to vector<16x1xf32>
    %145 = arith.addf %141, %144 : vector<16x1xf32>
    %146 = math.rsqrt %145 : vector<16x1xf32>
    %147 = vector.broadcast %146 : vector<16x1xf32> to vector<16x32xf32>
    %148 = arith.mulf %143, %147 : vector<16x32xf32>
    %149 = vector.broadcast %129 : vector<1x32xf32> to vector<16x32xf32>
    %150 = arith.mulf %148, %149 : vector<16x32xf32>
    %151 = vector.broadcast %130 : vector<1x32xf32> to vector<16x32xf32>
    %152 = arith.addf %150, %151 : vector<16x32xf32>
    %c0_54 = arith.constant 0 : index
    %c0_55 = arith.constant 0 : index
    %153 = vector.load %arg11[%c0_54, %c0_55] : memref<32x128xf32, #tpu.memory_space<vmem>>, vector<32x128xf32>
    %cst_56 = arith.constant dense<0.000000e+00> : vector<16x128xf32>
    %154 = tpu.matmul %152, %153, %cst_56 {dimension_numbers = #tpu.dot_dimension_numbers<[1], [0], [0], [1], [0, 0, 1, 1], [], []>} : vector<16x32xf32>, vector<32x128xf32>, vector<16x128xf32> -> vector<16x128xf32>
    %c0_57 = arith.constant 0 : index
    %c0_58 = arith.constant 0 : index
    %155 = vector.load %arg12[%c0_57, %c0_58] : memref<1x128xf32, #tpu.memory_space<vmem>>, vector<1x128xf32>
    %156 = vector.broadcast %155 : vector<1x128xf32> to vector<16x128xf32>
    %157 = arith.addf %154, %156 : vector<16x128xf32>
    %cst_59 = arith.constant 1.702000e+00 : f32
    %158 = vector.broadcast %cst_59 : f32 to vector<16x128xf32>
    %159 = arith.mulf %158, %157 : vector<16x128xf32>
    %160 = arith.negf %159 : vector<16x128xf32>
    %161 = math.exp %160 : vector<16x128xf32>
    %cst_60 = arith.constant 1.000000e+00 : f32
    %162 = vector.broadcast %cst_60 : f32 to vector<16x128xf32>
    %163 = arith.addf %162, %161 : vector<16x128xf32>
    %164 = arith.divf %162, %163 : vector<16x128xf32>
    %165 = arith.mulf %157, %164 : vector<16x128xf32>
    %c0_61 = arith.constant 0 : index
    %c0_62 = arith.constant 0 : index
    %166 = vector.load %arg13[%c0_61, %c0_62] : memref<128x32xf32, #tpu.memory_space<vmem>>, vector<128x32xf32>
    %cst_63 = arith.constant dense<0.000000e+00> : vector<16x32xf32>
    %167 = tpu.matmul %165, %166, %cst_63 {dimension_numbers = #tpu.dot_dimension_numbers<[1], [0], [0], [1], [0, 0, 1, 1], [], []>} : vector<16x128xf32>, vector<128x32xf32>, vector<16x32xf32> -> vector<16x32xf32>
    %c0_64 = arith.constant 0 : index
    %c0_65 = arith.constant 0 : index
    %168 = vector.load %arg14[%c0_64, %c0_65] : memref<1x32xf32, #tpu.memory_space<vmem>>, vector<1x32xf32>
    %169 = vector.broadcast %168 : vector<1x32xf32> to vector<16x32xf32>
    %170 = arith.addf %167, %169 : vector<16x32xf32>
    %171 = arith.addf %128, %170 : vector<16x32xf32>
    %172 = vector.shape_cast %171 : vector<16x32xf32> to vector<2x8x32xf32>
    %c0_66 = arith.constant 0 : index
    %c0_67 = arith.constant 0 : index
    %c0_68 = arith.constant 0 : index
    %173 = vector.load %arg15[%c0_66, %c0_67, %c0_68] : memref<2x8x32xf32, #tpu.memory_space<vmem>>, vector<2x8x32xf32>
    tpu.vector_store %arg15[%c0_66, %c0_67, %c0_68], %172 {strides = array<i32>} : memref<2x8x32xf32, #tpu.memory_space<vmem>>, vector<2x8x32xf32>,
    return
  }
  func.func @transform_0(%arg0: i32) -> (i32, i32, i32) {
    %c0_i32 = arith.constant 0 : i32
    %c0_i32_0 = arith.constant 0 : i32
    %c0_i32_1 = arith.constant 0 : i32
    return %arg0, %c0_i32, %c0_i32_0 : i32, i32, i32
  }
  func.func @transform_1(%arg0: i32) -> (i32, i32) {
    %c0_i32 = arith.constant 0 : i32
    %c0_i32_0 = arith.constant 0 : i32
    %c0_i32_1 = arith.constant 0 : i32
    return %c0_i32, %c0_i32_0 : i32, i32
  }
  func.func @transform_2(%arg0: i32) -> (i32, i32) {
    %c0_i32 = arith.constant 0 : i32
    %c0_i32_0 = arith.constant 0 : i32
    %c0_i32_1 = arith.constant 0 : i32
    return %c0_i32, %c0_i32_0 : i32, i32
  }
  func.func @transform_3(%arg0: i32) -> (i32, i32) {
    %c0_i32 = arith.constant 0 : i32
    %c0_i32_0 = arith.constant 0 : i32
    %c0_i32_1 = arith.constant 0 : i32
    return %c0_i32, %c0_i32_0 : i32, i32
  }
  func.func @transform_4(%arg0: i32) -> (i32, i32) {
    %c0_i32 = arith.constant 0 : i32
    %c0_i32_0 = arith.constant 0 : i32
    %c0_i32_1 = arith.constant 0 : i32
    return %c0_i32, %c0_i32_0 : i32, i32
  }
  func.func @transform_5(%arg0: i32) -> (i32, i32) {
    %c0_i32 = arith.constant 0 : i32
    %c0_i32_0 = arith.constant 0 : i32
    %c0_i32_1 = arith.constant 0 : i32
    return %c0_i32, %c0_i32_0 : i32, i32
  }
  func.func @transform_6(%arg0: i32) -> (i32, i32) {
    %c0_i32 = arith.constant 0 : i32
    %c0_i32_0 = arith.constant 0 : i32
    %c0_i32_1 = arith.constant 0 : i32
    return %c0_i32, %c0_i32_0 : i32, i32
  }
  func.func @transform_7(%arg0: i32) -> (i32, i32) {
    %c0_i32 = arith.constant 0 : i32
    %c0_i32_0 = arith.constant 0 : i32
    %c0_i32_1 = arith.constant 0 : i32
    return %c0_i32, %c0_i32_0 : i32, i32
  }
  func.func @transform_8(%arg0: i32) -> (i32, i32) {
    %c0_i32 = arith.constant 0 : i32
    %c0_i32_0 = arith.constant 0 : i32
    %c0_i32_1 = arith.constant 0 : i32
    return %c0_i32, %c0_i32_0 : i32, i32
  }
  func.func @transform_9(%arg0: i32) -> (i32, i32) {
    %c0_i32 = arith.constant 0 : i32
    %c0_i32_0 = arith.constant 0 : i32
    %c0_i32_1 = arith.constant 0 : i32
    return %c0_i32, %c0_i32_0 : i32, i32
  }
  func.func @transform_10(%arg0: i32) -> (i32, i32) {
    %c0_i32 = arith.constant 0 : i32
    %c0_i32_0 = arith.constant 0 : i32
    %c0_i32_1 = arith.constant 0 : i32
    return %c0_i32, %c0_i32_0 : i32, i32
  }
  func.func @transform_11(%arg0: i32) -> (i32, i32) {
    %c0_i32 = arith.constant 0 : i32
    %c0_i32_0 = arith.constant 0 : i32
    %c0_i32_1 = arith.constant 0 : i32
    return %c0_i32, %c0_i32_0 : i32, i32
  }
  func.func @transform_12(%arg0: i32) -> (i32, i32) {
    %c0_i32 = arith.constant 0 : i32
    %c0_i32_0 = arith.constant 0 : i32
    %c0_i32_1 = arith.constant 0 : i32
    return %c0_i32, %c0_i32_0 : i32, i32
  }
  func.func @transform_13(%arg0: i32) -> (i32, i32) {
    %c0_i32 = arith.constant 0 : i32
    %c0_i32_0 = arith.constant 0 : i32
    %c0_i32_1 = arith.constant 0 : i32
    return %c0_i32, %c0_i32_0 : i32, i32
  }
  func.func @transform_14(%arg0: i32) -> (i32, i32, i32) {
    %c0_i32 = arith.constant 0 : i32
    %c0_i32_0 = arith.constant 0 : i32
    %c0_i32_1 = arith.constant 0 : i32
    return %arg0, %c0_i32, %c0_i32_0 : i32, i32, i32
  }
}

</mosaic_0001>

<bundles_post_ra>
// kernel: tpu_custom_call.1
= control target key start
LH: loop header
LB: loop body
LE: loop exit
PB: predicated region body
PF: predicated region fallthrough
CT: control target
= control target key end

     0   :  { %vm52_vm0 = vcmask 261120   ;;  %s1444_s0 = inlined_call_operand.vmem [shape: f32[2,8,32], index: 0, kind: input, shape index: {}]   ;;  %s1445_s1 = inlined_call_operand.vmem [shape: f32[8,8], index: 1, kind: input, shape index: {}]   ;;  %s1446_s2 = inlined_call_operand.vmem [shape: f32[1,32], index: 2, kind: input, shape index: {}]   ;;  %s1447_s3 = inlined_call_operand.vmem [shape: f32[1,32], index: 3, kind: input, shape index: {}]   ;;  %s1448_s4 = inlined_call_operand.vmem [shape: f32[32,96], index: 4, kind: input, shape index: {}]   ;;  %s1449_s5 = inlined_call_operand.vmem [shape: f32[1,96], index: 5, kind: input, shape index: {}]   ;;  %s1450_s6 = inlined_call_operand.vmem [shape: f32[32,32], index: 6, kind: input, shape index: {}]   ;;  %s1451_s7 = inlined_call_operand.vmem [shape: f32[1,32], index: 7, kind: input, shape index: {}]   ;;  %s1452_s8 = inlined_call_operand.vmem [shape: f32[1,32], index: 8, kind: input, shape index: {}]   ;;  %s1453_s9 = inlined_call_operand.vmem [shape: f32[1,32], index: 9, kind: input, shape index: {}]   ;;  %s1454_s10 = inlined_call_operand.vmem [shape: f32[32,128], index: 10, kind: input, shape index: {}]   ;;  %s1455_s11 = inlined_call_operand.vmem [shape: f32[1,128], index: 11, kind: input, shape index: {}]   ;;  %s1456_s12 = inlined_call_operand.vmem [shape: f32[128,32], index: 12, kind: input, shape index: {}]   ;;  %s1457_s13 = inlined_call_operand.vmem [shape: f32[1,32], index: 13, kind: input, shape index: {}]   ;;  %s1458_s14 = inlined_call_operand.hbm [shape: f32[2,8,32], index: 14, kind: output, shape index: {}]  }
   0x1   :  { %v1175_v0 = vld [vmem:[%s1444_s0] sm:$0xff] }
   0x2   :  { %v53_v1 = vsel %vm52_vm0, %v1175_v0, 0.0 }
   0x3   :  { %54 = vadd.xlane.f32.xlu0 %v53_v1 }
   0x4   :  { %19 = vsyncpa [#allocation4], 0  ;;  %v1182_v2 = vld [vmem:[%s1444_s0 + $0x8] sm:$0xff]  ;;  %v1080_v4 = vmov 32.0   ;;  %v117_v21 = vld [vmem:[%s1448_s4 + $0x18] sm:$0xff]  ;;  %s1082_s28 = smov 64  }
   0x5   :  { %v56_v3 = vsel %vm52_vm0, %v1182_v2, 0.0  ;;  %1004 = vrcp.f32 %v1080_v4  ;;  %140 = vmatpush.msra.mxu0 %v117_v21  ;;  %v116_v22 = vld [vmem:[%s1448_s4 + $0x10] sm:$0xff]  ;;  %v115_v23 = vld [vmem:[%s1448_s4 + $0x8] sm:$0xff]  ;;  %v114_v24 = vld [vmem:[%s1448_s4] sm:$0xff]  ;;  %s1083_s29 = smov 120   ;;  %vm155_vm8 = vcmask 64512  }
   0x6   :  { %v996_v39 = vld [vmem:[%s1446_s2] ss:$0 sm:$0xff]  ;;  %s1084_s15 = smov 88   ;;  %s1085_s16 = smov 56   ;;  %vm421_vm9 = vcmask 130112   ;;  %vm562_vm10 = vcmask 195712  }
   0x7   :  { %141 = vmatpush.msra.mxu0 %v116_v22  ;;  %v997_v43 = vld [vmem:[%s1447_s3] ss:$0 sm:$0xff]  ;;  %s1081_s3 = smov 96   ;;  %s1087_s0 = smov 104   ;;  %vm703_vm11 = vcmask 261312  }
   0x8   :  { %v998_v53 = vld [vmem:[%s1449_s5] ss:$0 sm:$0xff]  ;;  %s1088_s17 = smov 80   ;;  %s1089_s18 = smov 72  }
   0x9   :  { %142 = vmatpush.msra.mxu0 %v115_v23  ;;  %v1236_v61 = vld [vmem:[%s1445_s1] sm:$0xff]  ;;  %s1086_s1 = smov 112   ;;  %s1090_s19 = smov 40  }
   0xa   :  { %s1091_s20 = smov 48   ;;  %s1092_s21 = smov 8  }
   0xb   :  { %57 = vadd.xlane.f32.xlu0 %v56_v3  ;;  %v1005_v5 = vpop.eup %1004  ;;  %143 = vmatpush.msra.mxu0 %v114_v24  ;;  %s1093_s22 = smov 16   ;;  %s1094_s23 = smov 24  }
   0xc   :  { %v60_v6 = vmul.f32 32.0, %v1005_v5  ;;  %vm64_vm1 = vweird.f32 %v1005_v5 }
   0xe   :  { %v61_v7 = vsub.f32 1.0, %v60_v6 }
  0x10   :  { %v62_v8 = vmul.f32 %v1005_v5, %v61_v7 }
  0x12   :  { %v63_v9 = vadd.f32 %v1005_v5, %v62_v8 }
  0x14   :  { %v1186_v10 = vsel %vm64_vm1, %v1005_v5, %v63_v9 }
  0x76   :  { %v55_v11 = vpop.xlane.xlu0 %54 }
  0x77   :  { %v66_v12 = vmul.f32 %v1186_v10, %v55_v11 }
  0x79   :  { %v68_v13 = vsub.f32 %v1175_v0, %v66_v12 }
  0x7b   :  { %v70_v14 = vmul.f32 %v68_v13, %v68_v13 }
  0x7d   :  { %v72_v15 = vsel %vm52_vm0, %v70_v14, 0.0 }
  0x7e   :  { %73 = vadd.xlane.f32.xlu1 %v72_v15  ;;  %v58_v16 = vpop.xlane.xlu0 %57 }
  0x7f   :  { %v67_v17 = vmul.f32 %v1186_v10, %v58_v16 }
  0x81   :  { %v69_v18 = vsub.f32 %v1182_v2, %v67_v17 }
  0x83   :  { %v71_v19 = vmul.f32 %v69_v18, %v69_v18 }
  0x85   :  { %v75_v20 = vsel %vm52_vm0, %v71_v19, 0.0 }
  0x86   :  { %76 = vadd.xlane.f32.xlu1 %v75_v20 }
  0xf1   :  { %v74_v25 = vpop.xlane.xlu1 %73 }
  0xf2   :  { %v78_v26 = vmul.f32 %v74_v25, %v1186_v10 }
  0xf4   :  { %v80_v27 = vadd.f32 1e-05, %v78_v26 }
  0xf6   :  { %1006 = vrsqrt.f32 %v80_v27  ;;  %vm88_vm3 = vweird.f32 %v80_v27 }
  0xf9   :  { %v77_v28 = vpop.xlane.xlu1 %76 }
  0xfa   :  { %v79_v29 = vmul.f32 %v77_v28, %v1186_v10 }
  0xfc   :  { %v1007_v30 = vpop.eup %1006  ;;  %v81_v31 = vadd.f32 1e-05, %v79_v29 }
  0xfd   :  { %v83_v32 = vmul.f32 %v1007_v30, %v80_v27  ;;  %vm89_vm2 = vweird.f32 %v1007_v30 }
  0xfe   :  { %1008 = vrsqrt.f32 %v81_v31  ;;  %vm90_vm4 = vmor %vm88_vm3, %vm89_vm2  ;;  %vm98_vm6 = vweird.f32 %v81_v31 }
  0xff   :  { %v84_v33 = vmul.f32 %v1007_v30, %v83_v32 }
 0x101   :  { %v85_v34 = vmul.f32 0.5, %v84_v33 }
 0x103   :  { %v86_v35 = vsub.f32 1.5, %v85_v34 }
 0x104   :  { %v1009_v36 = vpop.eup %1008 }
 0x105   :  { %v87_v37 = vmul.f32 %v1007_v30, %v86_v35  ;;  %v93_v38 = vmul.f32 %v1009_v36, %v81_v31  ;;  %vm99_vm5 = vweird.f32 %v1009_v36 }
 0x106   :  { %vm100_vm7 = vmor %vm98_vm6, %vm99_vm5 }
 0x107   :  { %v91_v40 = vsel %vm90_vm4, %v1007_v30, %v87_v37  ;;  %v94_v41 = vmul.f32 %v1009_v36, %v93_v38 }
 0x108   :  { %v102_v42 = vmul.f32 %v91_v40, %v68_v13 }
 0x109   :  { %v95_v44 = vmul.f32 0.5, %v94_v41 }
 0x10a   :  { %v107_v45 = vmul.f32 %v996_v39, %v102_v42 }
 0x10b   :  { %v96_v46 = vsub.f32 1.5, %v95_v44 }
 0x10c   :  { %v112_v47 = vadd.f32 %v997_v43, %v107_v45 }
 0x10d   :  { %v97_v48 = vmul.f32 %v1009_v36, %v96_v46 }
 0x10e   :  { %947 = vmatmul.msk.f32.vlgmr.msra.gmra.mxu0 %vm52_vm0, %v112_v47 }
 0x10f   :  { %v101_v49 = vsel %vm100_vm7, %v1009_v36, %v97_v48 }
 0x110   :  { %v103_v50 = vmul.f32 %v101_v49, %v69_v18 }
 0x112   :  { %v108_v51 = vmul.f32 %v996_v39, %v103_v50 }
 0x114   :  { %v113_v52 = vadd.f32 %v997_v43, %v108_v51 }
 0x116   :  { %948 = vmatmul.msk.f32.gmra.mxu0 %vm52_vm0, %v113_v52 }
 0x18b   :  { %v145_v54 = vpop.f32.mrf.mxu0 }
 0x18c   :  { %v1219_v55 = vadd.f32 %v998_v53, %v145_v54 }
 0x18e   :  { %153 = vrot.lane.b32.xlu2 %v1219_v55, %s1081_s3 }
 0x193   :  { %v148_v56 = vpop.f32.mrf.mxu0 }
 0x194   :  { %v1222_v57 = vadd.f32 %v998_v53, %v148_v56 }
 0x196   :  { %181 = vrot.lane.b32.xlu2 %v1222_v57, %s1081_s3  ;;  %s935_s3 = sshll.u32 %s1458_s14, 4  ;;  %s936_s3 = int_to_ptr.hbm [resolvable:$true] %s935_s3 }
 0x19e   :  { %225 = vrot.lane.b32.xlu2 %v1219_v55, %s1082_s28 }
 0x1a6   :  { %283 = vrot.lane.b32.xlu2 %v1219_v55, %s1083_s29 }
 0x1e8   :  { %v154_v58 = vpop.permute.xlu2 %153 }
 0x1e9   :  { %949 = vmatpush.xpose.msk.msra.mxu1 %vm155_vm8, %v154_v58 }
 0x1ec   :  { %950 = vmatmul.msk.f32.vlgmr.msra.gmra.mxu1 %vm155_vm8, %v1219_v55 }
 0x1f0   :  { %v182_v59 = vpop.permute.xlu2 %181 }
 0x1f1   :  { %951 = vmatpush.xpose.msk.msra.mxu2 %vm155_vm8, %v182_v59 }
 0x1f4   :  { %952 = vmatmul.msk.f32.vlgmr.msra.gmra.mxu2 %vm155_vm8, %v1222_v57 }
 0x1f8   :  { %v226_v60 = vpop.permute.xlu2 %225 }
 0x1f9   :  { %246 = vmatpush.msrb.mxu1 %v226_v60 }
 0x200   :  { %v284_v19 = vpop.permute.xlu2 %283 }
 0x269   :  { %v177_v62 = vpop.f32.mrf.mxu1 }
 0x26a   :  { %v178_v63 = vadd.f32 %v177_v62, %v1236_v61 }
 0x26c   :  { %v207_v1 = vsel %vm155_vm8, %v178_v63, -inf }
 0x26d   :  { %208 = vmax.xlane.f32.xlu0 %v207_v1 }
 0x277   :  { %v204_v3 = vpop.f32.mrf.mxu2 }
 0x278   :  { %v205_v4 = vadd.f32 %v204_v3, %v1236_v61 }
 0x27a   :  { %v210_v5 = vsel %vm155_vm8, %v205_v4, -inf }
 0x27b   :  { %211 = vmax.xlane.f32.xlu1 %v210_v5 }
 0x281   :  { %251 = vrot.lane.b32.xlu0 %v1222_v57, %s1082_s28  ;;  %s1095_s28 = smov [#allocation3]  }
 0x289   :  { %313 = vrot.lane.b32.xlu0 %v1222_v57, %s1084_s15 }
 0x291   :  { %357 = vrot.lane.b32.xlu0 %v1219_v55, %s1085_s16 }
 0x294   :  { %285 = vrot.lane.b32.xlu1 %v1219_v55, %s1084_s15 }
 0x299   :  { %424 = vrot.lane.b32.xlu0 %v1219_v55, %s1086_s1 }
 0x29c   :  { %311 = vrot.lane.b32.xlu1 %v1222_v57, %s1083_s29 }
 0x2a1   :  { %565 = vrot.lane.b32.xlu0 %v1219_v55, %s1087_s0 }
 0x2a4   :  { %426 = vrot.lane.b32.xlu1 %v1219_v55, %s1088_s17 }
 0x2a9   :  { %595 = vrot.lane.b32.xlu0 %v1222_v57, %s1089_s18 }
 0x2ac   :  { %567 = vrot.lane.b32.xlu1 %v1219_v55, %s1089_s18 }
 0x2b4   :  { %454 = vrot.lane.b32.xlu1 %v1222_v57, %s1088_s17 }
 0x2bc   :  { %593 = vrot.lane.b32.xlu1 %v1222_v57, %s1087_s0 }
 0x2e0   :  { %v209_v6 = vpop.xlane.xlu0 %208 }
 0x2e1   :  { %v213_v7 = vsub.f32 %v178_v63, %v209_v6 }
 0x2e3   :  { %v215_v8 = vmul.f32 1.442695, %v213_v7 }
 0x2e5   :  { %1010 = vpow2.f32 %v215_v8 }
 0x2eb   :  { %v1256_v9 = vpop.eup %1010 }
 0x2ec   :  { %953 = vmatmul.msk.f32.vlgmr.msrb.gmra.mxu1 %vm155_vm8, %v1256_v9 }
 0x2ee   :  { %v212_v11 = vpop.xlane.xlu1 %211 }
 0x2ef   :  { %v214_v12 = vsub.f32 %v205_v4, %v212_v11 }
 0x2f1   :  { %v217_v13 = vmul.f32 1.442695, %v214_v12 }
 0x2f3   :  { %1012 = vpow2.f32 %v217_v13  ;;  %v252_v14 = vpop.permute.xlu0 %251 }
 0x2f4   :  { %272 = vmatpush.msra.mxu1 %v252_v14 }
 0x2f9   :  { %v1260_v15 = vpop.eup %1012 }
 0x2fa   :  { %954 = vmatmul.msk.f32.vlgmr.msra.gmra.mxu1 %vm155_vm8, %v1260_v15 }
 0x2fb   :  { %v314_v16 = vpop.permute.xlu0 %313 }
 0x2fc   :  { %957 = vmatpush.xpose.msk.msrb.mxu2 %vm155_vm8, %v314_v16 }
 0x303   :  { %v358_v17 = vpop.permute.xlu0 %357 }
 0x304   :  { %378 = vmatpush.msra.mxu2 %v358_v17 }
 0x306   :  { %v286_v18 = vpop.permute.xlu1 %285 }
 0x307   :  { %955 = vmatpush.xpose.msk.msrb.mxu1 %vm155_vm8, %v286_v18 }
 0x30a   :  { %956 = vmatmul.msk.f32.vlgmr.msrb.gmra.mxu1 %vm155_vm8, %v284_v19 }
 0x30b   :  { %v425_v21 = vpop.permute.xlu0 %424 }
 0x30e   :  { %v312_v20 = vpop.permute.xlu1 %311 }
 0x30f   :  { %958 = vmatmul.msk.f32.vlgmr.msrb.gmra.mxu2 %vm155_vm8, %v312_v20 }
 0x313   :  { %v566_v23 = vpop.permute.xlu0 %565 }
 0x316   :  { %v427_v22 = vpop.permute.xlu1 %426 }
 0x317   :  { %961 = vmatpush.xpose.msk.msrb.mxu2 %vm155_vm8, %v427_v22  ;;  %v219_v22 = vsel %vm155_vm8, %v1256_v9, 0.0 }
 0x31b   :  { %v596_v26 = vpop.permute.xlu0 %595 }
 0x31e   :  { %v568_v24 = vpop.permute.xlu1 %567 }
 0x326   :  { %v455_v25 = vpop.permute.xlu1 %454 }
 0x327   :  { %963 = vmatpush.xpose.msk.msrb.mxu0 %vm155_vm8, %v455_v25 }
 0x32b   :  { %969 = vmatpush.xpose.msk.msra.mxu0 %vm155_vm8, %v596_v26 }
 0x32e   :  { %v594_v37 = vpop.permute.xlu1 %593 }
 0x369   :  { %v1271_v27 = vpop.f32.mrf.mxu1 }
 0x377   :  { %v1273_v28 = vpop.f32.mrf.mxu1 }
 0x387   :  { %v308_v29 = vpop.f32.mrf.mxu1 }
 0x388   :  { %v309_v30 = vadd.f32 %v308_v29, %v1236_v61 }
 0x38a   :  { %v339_v31 = vsel %vm155_vm8, %v309_v30, -inf }
 0x38b   :  { %340 = vmax.xlane.f32.xlu2 %v339_v31 }
 0x392   :  { %v336_v32 = vpop.f32.mrf.mxu2 }
 0x393   :  { %v337_v33 = vadd.f32 %v336_v32, %v1236_v61 }
 0x395   :  { %v342_v34 = vsel %vm155_vm8, %v337_v33, -inf }
 0x396   :  { %343 = vmax.xlane.f32.xlu1 %v342_v34 }
 0x3a3   :  { %452 = vrot.lane.b32.xlu2 %v1222_v57, %s1086_s1 }
 0x3ab   :  { %383 = vrot.lane.b32.xlu2 %v1222_v57, %s1085_s16 }
 0x3fe   :  { %v341_v35 = vpop.xlane.xlu2 %340 }
 0x3ff   :  { %v345_v36 = vsub.f32 %v309_v30, %v341_v35 }
 0x401   :  { %v347_v38 = vmul.f32 1.442695, %v345_v36 }
 0x403   :  { %1014 = vpow2.f32 %v347_v38 }
 0x406   :  { %v453_v39 = vpop.permute.xlu2 %452 }
 0x407   :  { %964 = vmatmul.msk.f32.vlgmr.msrb.gmra.mxu0 %vm155_vm8, %v453_v39 }
 0x409   :  { %v1015_v40 = vpop.eup %1014  ;;  %v344_v41 = vpop.xlane.xlu1 %343 }
 0x40a   :  { %v346_v42 = vsub.f32 %v337_v33, %v344_v41  ;;  %959 = vmatmul.msk.f32.vlgmr.msra.gmra.mxu2 %vm155_vm8, %v1015_v40  ;;  %v351_v63 = vsel %vm155_vm8, %v1015_v40, 0.0 }
 0x40b   :  { %967 = vmatpush.xpose.msk.msra.mxu2 %vm155_vm8, %v568_v24 }
 0x40c   :  { %v349_v43 = vmul.f32 1.442695, %v346_v42 }
 0x40e   :  { %1016 = vpow2.f32 %v349_v43  ;;  %v384_v44 = vpop.permute.xlu2 %383 }
 0x40f   :  { %404 = vmatpush.msra.mxu1 %v384_v44  ;;  %970 = vmatmul.msk.f32.vlgmr.msra.gmra.mxu0 %vm155_vm8, %v594_v37 }
 0x412   :  { %962 = vmatmul.msk.f32.vlgmr.msrb.gmra.mxu2 %vm155_vm8, %v425_v21  ;;  %v222_v21 = vsel %vm155_vm8, %v1260_v15, 0.0 }
 0x414   :  { %v1017_v45 = vpop.eup %1016 }
 0x415   :  { %960 = vmatmul.msk.f32.vlgmr.msra.gmra.mxu1 %vm155_vm8, %v1017_v45  ;;  %v354_v62 = vsel %vm155_vm8, %v1017_v45, 0.0 }
 0x41a   :  { %968 = vmatmul.msk.f32.vlgmr.msra.gmra.mxu2 %vm155_vm8, %v566_v23 }
 0x484   :  { %v477_v46 = vpop.f32.mrf.mxu0 }
 0x485   :  { %v478_v47 = vadd.f32 %v477_v46, %v1236_v61 }
 0x487   :  { %v483_v48 = vsel %vm155_vm8, %v478_v47, -inf }
 0x488   :  { %484 = vmax.xlane.f32.xlu1 %v483_v48 }
 0x48c   :  { %v618_v58 = vpop.f32.mrf.mxu0 }
 0x48d   :  { %v1292_v49 = vpop.f32.mrf.mxu2  ;;  %v619_v59 = vadd.f32 %v618_v58, %v1236_v61  ;;  %v711_v58 = vld [vmem:[%s1450_s6 + $0x18] sm:$0xff] }
 0x48e   :  { %734 = vmatpush.msrb.mxu2 %v711_v58  ;;  %v895_v58 = vld [vmem:[%s1456_s12 + $0x68] sm:$0xff] }
 0x48f   :  { %v624_v60 = vsel %vm155_vm8, %v619_v59, -inf }
 0x492   :  { %v406_v34 = vpop.f32.mrf.mxu1 }
 0x495   :  { %v449_v50 = vpop.f32.mrf.mxu2 }
 0x496   :  { %v450_v51 = vadd.f32 %v449_v50, %v1236_v61 }
 0x498   :  { %v480_v52 = vsel %vm155_vm8, %v450_v51, -inf }
 0x499   :  { %481 = vmax.xlane.f32.xlu0 %v480_v52 }
 0x49d   :  { %v590_v53 = vpop.f32.mrf.mxu2 }
 0x49e   :  { %v591_v54 = vadd.f32 %v590_v53, %v1236_v61 }
 0x4a0   :  { %v621_v56 = vsel %vm155_vm8, %v591_v54, -inf }
 0x4a1   :  { %639 = vrot.lane.b32.xlu1 %v1219_v55, %s1090_s19  ;;  %622 = vmax.xlane.f32.xlu2 %v621_v56 }
 0x4a9   :  { %665 = vrot.lane.b32.xlu1 %v1222_v57, %s1090_s19 }
 0x4ad   :  { %498 = vrot.lane.b32.xlu0 %v1219_v55, %s1091_s20 }
 0x4b9   :  { %524 = vrot.lane.b32.xlu2 %v1222_v57, %s1091_s20 }
 0x4d7   :  { %625 = vmax.xlane.f32.xlu0 %v624_v60  ;;  %v709_v60 = vld [vmem:[%s1450_s6 + $0x8] sm:$0xff] }
 0x4df   :  { %355 = vadd.xlane.f32.xlu0 %v354_v62  ;;  %v708_v62 = vld [vmem:[%s1450_s6] sm:$0xff] }
 0x4e2   :  { %352 = vadd.xlane.f32.xlu2 %v351_v63 }
 0x4fb   :  { %v485_v1 = vpop.xlane.xlu1 %484 }
 0x4fc   :  { %v487_v3 = vsub.f32 %v478_v47, %v485_v1 }
 0x4fe   :  { %v490_v4 = vmul.f32 1.442695, %v487_v3 }
 0x500   :  { %1018 = vpow2.f32 %v490_v4 }
 0x506   :  { %v1019_v5 = vpop.eup %1018 }
 0x507   :  { %v495_v55 = vsel %vm155_vm8, %v1019_v5, 0.0 }
 0x508   :  { %496 = vadd.xlane.f32.xlu0 %v495_v55 }
 0x50c   :  { %v482_v57 = vpop.xlane.xlu0 %481 }
 0x50d   :  { %v486_v6 = vsub.f32 %v450_v51, %v482_v57 }
 0x50f   :  { %v488_v61 = vmul.f32 1.442695, %v486_v6  ;;  %v999_v6 = vld [vmem:[%s1451_s7] ss:$0 sm:$0xff] }
 0x511   :  { %1020 = vpow2.f32 %v488_v61 }
 0x513   :  { %v640_v7 = vpop.permute.xlu1 %639 }
 0x514   :  { %v623_v8 = vpop.xlane.xlu2 %622 }
 0x515   :  { %v627_v11 = vsub.f32 %v591_v54, %v623_v8 }
 0x517   :  { %v1021_v12 = vpop.eup %1020  ;;  %v629_v13 = vmul.f32 1.442695, %v627_v11 }
 0x518   :  { %v492_v14 = vsel %vm155_vm8, %v1021_v12, 0.0 }
 0x519   :  { %1022 = vpow2.f32 %v629_v13  ;;  %493 = vadd.xlane.f32.xlu1 %v492_v14 }
 0x51b   :  { %v666_v17 = vpop.permute.xlu1 %665 }
 0x51c   :  { %v525_v16 = vpop.permute.xlu2 %524 }
 0x51d   :  { %545 = vmatpush.msrb.mxu1 %v525_v16 }
 0x51e   :  { %966 = vmatmul.msk.f32.vlgmr.msrb.gmra.mxu1 %vm155_vm8, %v1019_v5 }
 0x51f   :  { %v1023_v18 = vpop.eup %1022  ;;  %686 = vmatpush.msra.mxu1 %v666_v17  ;;  %v499_v19 = vpop.permute.xlu0 %498 }
 0x520   :  { %519 = vmatpush.msra.mxu3 %v499_v19  ;;  %v633_v20 = vsel %vm155_vm8, %v1023_v18, 0.0 }
 0x521   :  { %634 = vadd.xlane.f32.xlu0 %v633_v20  ;;  %223 = vadd.xlane.f32.xlu1 %v222_v21 }
 0x522   :  { %965 = vmatmul.msk.f32.vlgmr.msra.gmra.mxu3 %vm155_vm8, %v1021_v12 }
 0x523   :  { %660 = vmatpush.msrb.mxu3 %v640_v7 }
 0x529   :  { %220 = vadd.xlane.f32.xlu0 %v219_v22 }
 0x52a   :  { %971 = vmatmul.msk.f32.vlgmr.msrb.gmra.mxu3 %vm155_vm8, %v1023_v18 }
 0x54a   :  { %v626_v23 = vpop.xlane.xlu0 %625 }
 0x54b   :  { %v628_v24 = vsub.f32 %v619_v59, %v626_v23  ;;  %v710_v59 = vld [vmem:[%s1450_s6 + $0x10] sm:$0xff]  ;;  %s933_s6 = sshll.u32 %s1095_s28, 4  ;;  %s934_s6 = int_to_ptr.vmem [resolvable:$true] %s933_s6 }
 0x54c   :  { %735 = vmatpush.msrb.mxu2 %v710_v59  ;;  %v894_v59 = vld [vmem:[%s1456_s12 + $0x60] sm:$0xff] }
 0x54d   :  { %v631_v25 = vmul.f32 1.442695, %v628_v24 }
 0x54e   :  { %736 = vmatpush.msrb.mxu2 %v709_v60  ;;  %v893_v60 = vld [vmem:[%s1456_s12 + $0x58] sm:$0xff] }
 0x54f   :  { %1024 = vpow2.f32 %v631_v25  ;;  %v806_v25 = vld [vmem:[%s1454_s10 + $0x18] sm:$0xff] }
 0x550   :  { %737 = vmatpush.msrb.mxu2 %v708_v62  ;;  %829 = vmatpush.msrb.mxu0 %v806_v25  ;;  %v892_v62 = vld [vmem:[%s1456_s12 + $0x50] sm:$0xff] }
 0x552   :  { %v356_v9 = vpop.xlane.xlu0 %355 }
 0x555   :  { %v1025_v26 = vpop.eup %1024  ;;  %v353_v29 = vpop.xlane.xlu2 %352 }
 0x556   :  { %972 = vmatmul.msk.f32.vlgmr.msra.gmra.mxu1 %vm155_vm8, %v1025_v26  ;;  %v636_v15 = vsel %vm155_vm8, %v1025_v26, 0.0  ;;  %1026 = vrcp.f32 %v353_v29  ;;  %v805_v26 = vld [vmem:[%s1454_s10 + $0x10] sm:$0xff]  ;;  %v803_v29 = vld [vmem:[%s1454_s10] sm:$0xff] }
 0x557   :  { %637 = vadd.xlane.f32.xlu2 %v636_v15  ;;  %830 = vmatpush.msrb.mxu0 %v805_v26  ;;  %v804_v15 = vld [vmem:[%s1454_s10 + $0x8] sm:$0xff] }
 0x559   :  { %831 = vmatpush.msrb.mxu0 %v804_v15 }
 0x55b   :  { %832 = vmatpush.msrb.mxu0 %v803_v29 }
 0x55c   :  { %v1027_v30 = vpop.eup %1026 }
 0x55d   :  { %v411_v31 = vmul.f32 %v1027_v30, %v1292_v49 }
 0x56f   :  { %415 = vrot.lane.b32.xlu2 %v411_v31, %s1092_s21 }
 0x57b   :  { %v497_v32 = vpop.xlane.xlu0 %496 }
 0x57c   :  { %1028 = vrcp.f32 %v497_v32 }
 0x582   :  { %v1029_v37 = vpop.eup %1028 }
 0x58c   :  { %v494_v33 = vpop.xlane.xlu1 %493 }
 0x594   :  { %v224_v35 = vpop.xlane.xlu1 %223  ;;  %v635_v36 = vpop.xlane.xlu0 %634 }
 0x595   :  { %1030 = vrcp.f32 %v224_v35 }
 0x59b   :  { %v1031_v38 = vpop.eup %1030  ;;  %v547_v39 = vpop.f32.mrf.mxu1 }
 0x59c   :  { %v553_v40 = vmul.f32 %v1029_v37, %v547_v39  ;;  %v221_v41 = vpop.xlane.xlu0 %220  ;;  %v280_v42 = vmul.f32 %v1031_v38, %v1273_v28  ;;  %v1000_v38 = vld [vmem:[%s1452_s8] ss:$0 sm:$0xff] }
 0x59d   :  { %1032 = vrcp.f32 %v221_v41  ;;  %v1001_v41 = vld [vmem:[%s1453_s9] ss:$0 sm:$0xff] }
 0x59e   :  { %558 = vrot.lane.b32.xlu2 %v553_v40, %s1093_s22  ;;  %282 = vst.msk [vmem:[#allocation2 + $0x8] sm:$0xff] %vm155_vm8, %v280_v42  ;;  %1034 = vrcp.f32 %v494_v33 }
 0x59f   :  { %1036 = vrcp.f32 %v356_v9 }
 0x5a0   :  { %1038 = vrcp.f32 %v635_v36 }
 0x5a3   :  { %v1033_v43 = vpop.eup %1032 }
 0x5a4   :  { %v279_v44 = vmul.f32 %v1033_v43, %v1271_v27  ;;  %v1035_v45 = vpop.eup %1034 }
 0x5a5   :  { %v521_v46 = vpop.f32.mrf.mxu3  ;;  %v1037_v48 = vpop.eup %1036 }
 0x5a6   :  { %v552_v47 = vmul.f32 %v1035_v45, %v521_v46  ;;  %281 = vst.msk [vmem:[#allocation2] sm:$0xff] %vm155_vm8, %v279_v44  ;;  %v1039_v49 = vpop.eup %1038  ;;  %v412_v51 = vmul.f32 %v1037_v48, %v406_v34 }
 0x5a8   :  { %556 = vrot.lane.b32.xlu0 %v552_v47, %s1093_s22 }
 0x5ad   :  { %v662_v28 = vpop.f32.mrf.mxu3 }
 0x5ae   :  { %v693_v50 = vmul.f32 %v1039_v49, %v662_v28 }
 0x5b0   :  { %417 = vrot.lane.b32.xlu0 %v412_v51, %s1092_s21  ;;  %697 = vrot.lane.b32.xlu1 %v693_v50, %s1094_s23 }
 0x5ca   :  { %v638_v52 = vpop.xlane.xlu2 %637 }
 0x5cb   :  { %1040 = vrcp.f32 %v638_v52 }
 0x5d1   :  { %v1041_v53 = vpop.eup %1040 }
 0x5d2   :  { %v416_v27 = vpop.permute.xlu2 %415 }
 0x5d3   :  { %422 = vst.msk [vmem:[#allocation2] sm:$0xff] %vm421_vm9, %v416_v27  ;;  %v688_v54 = vpop.f32.mrf.mxu1 }
 0x5d4   :  { %v694_v56 = vmul.f32 %v1041_v53, %v688_v54 }
 0x5d6   :  { %699 = vrot.lane.b32.xlu1 %v694_v56, %s1094_s23  ;;  %v896_v56 = vld [vmem:[%s1456_s12 + $0x70] sm:$0xff] }
 0x5f8   :  { %v559_v4 = vpop.permute.xlu2 %558 }
 0x61a   :  { %v557_v63 = vpop.permute.xlu0 %556 }
 0x61b   :  { %563 = vst.msk [vmem:[#allocation2] sm:$0xff] %vm562_vm10, %v557_v63  ;;  %v891_v63 = vld [vmem:[%s1456_s12 + $0x48] sm:$0xff] }
 0x622   :  { %v698_v1 = vpop.permute.xlu1 %697  ;;  %v418_v3 = vpop.permute.xlu0 %417 }
 0x623   :  { %704 = vst.msk [vmem:[#allocation2] sm:$0xff] %vm703_vm11, %v698_v1  ;;  %v890_v1 = vld [vmem:[%s1456_s12 + $0x40] sm:$0xff] }
 0x624   :  { %423 = vst.msk [vmem:[#allocation2 + $0x8] sm:$0xff] %vm421_vm9, %v418_v3  ;;  %v889_v3 = vld [vmem:[%s1456_s12 + $0x38] sm:$0xff] }
 0x625   :  { %564 = vst.msk [vmem:[#allocation2 + $0x8] sm:$0xff] %vm562_vm10, %v559_v4  ;;  %v888_v4 = vld [vmem:[%s1456_s12 + $0x30] sm:$0xff] }
 0x62a   :  { %v706_v5 = vld [vmem:[#allocation2] sm:$0xff] }
 0x62b   :  { %973 = vmatmul.msk.f32.vlgmr.msrb.gmra.mxu2 %vm52_vm0, %v706_v5  ;;  %v887_v5 = vld [vmem:[%s1456_s12 + $0x28] sm:$0xff] }
 0x648   :  { %v700_v55 = vpop.permute.xlu1 %699 }
 0x649   :  { %705 = vst.msk [vmem:[#allocation2 + $0x8] sm:$0xff] %vm703_vm11, %v700_v55  ;;  %v886_v55 = vld [vmem:[%s1456_s12 + $0x20] sm:$0xff] }
 0x650   :  { %v707_v57 = vld [vmem:[#allocation2 + $0x8] sm:$0xff] }
 0x651   :  { %974 = vmatmul.msk.f32.gmra.mxu2 %vm52_vm0, %v707_v57  ;;  %v885_v57 = vld [vmem:[%s1456_s12 + $0x18] sm:$0xff] }
 0x6ae   :  { %v739_v61 = vpop.f32.mrf.mxu2 }
 0x6af   :  { %v740_v7 = vadd.f32 %v999_v6, %v739_v61  ;;  %v884_v61 = vld [vmem:[%s1456_s12 + $0x10] sm:$0xff] }
 0x6b1   :  { %v1345_v8 = vadd.f32 %v740_v7, %v1175_v0 }
 0x6b3   :  { %v749_v11 = vsel %vm52_vm0, %v1345_v8, 0.0 }
 0x6b4   :  { %750 = vadd.xlane.f32.xlu0 %v749_v11  ;;  %v883_v11 = vld [vmem:[%s1456_s12 + $0x8] sm:$0xff] }
 0x6d4   :  { %v742_v12 = vpop.f32.mrf.mxu2 }
 0x6d5   :  { %v743_v13 = vadd.f32 %v999_v6, %v742_v12  ;;  %v1002_v6 = vld [vmem:[%s1455_s11] ss:$0 sm:$0xff] }
 0x6d7   :  { %v1350_v14 = vadd.f32 %v743_v13, %v1182_v2  ;;  %v882_v13 = vld [vmem:[%s1456_s12] sm:$0xff] }
 0x6d9   :  { %v752_v16 = vsel %vm52_vm0, %v1350_v14, 0.0 }
 0x6da   :  { %753 = vadd.xlane.f32.xlu2 %v752_v16 }
 0x727   :  { %v751_v17 = vpop.xlane.xlu0 %750 }
 0x728   :  { %v755_v18 = vmul.f32 %v751_v17, %v1186_v10 }
 0x72a   :  { %v757_v19 = vsub.f32 %v1345_v8, %v755_v18 }
 0x72c   :  { %v759_v0 = vmul.f32 %v757_v19, %v757_v19 }
 0x72e   :  { %v761_v20 = vsel %vm52_vm0, %v759_v0, 0.0 }
 0x72f   :  { %762 = vadd.xlane.f32.xlu1 %v761_v20 }
 0x74d   :  { %v754_v21 = vpop.xlane.xlu2 %753 }
 0x74e   :  { %v756_v22 = vmul.f32 %v754_v21, %v1186_v10 }
 0x750   :  { %v758_v23 = vsub.f32 %v1350_v14, %v756_v22 }
 0x752   :  { %v760_v2 = vmul.f32 %v758_v23, %v758_v23 }
 0x754   :  { %v764_v24 = vsel %vm52_vm0, %v760_v2, 0.0 }
 0x755   :  { %765 = vadd.xlane.f32.xlu0 %v764_v24 }
 0x7a2   :  { %v763_v30 = vpop.xlane.xlu1 %762 }
 0x7a3   :  { %v767_v31 = vmul.f32 %v763_v30, %v1186_v10 }
 0x7a5   :  { %v769_v9 = vadd.f32 1e-05, %v767_v31 }
 0x7a7   :  { %1042 = vrsqrt.f32 %v769_v9  ;;  %vm777_vm13 = vweird.f32 %v769_v9 }
 0x7ad   :  { %v1043_v32 = vpop.eup %1042 }
 0x7ae   :  { %v772_v33 = vmul.f32 %v1043_v32, %v769_v9  ;;  %vm778_vm12 = vweird.f32 %v1043_v32 }
 0x7af   :  { %vm779_vm14 = vmor %vm777_vm13, %vm778_vm12 }
 0x7b0   :  { %v773_v34 = vmul.f32 %v1043_v32, %v772_v33 }
 0x7b2   :  { %v774_v35 = vmul.f32 0.5, %v773_v34 }
 0x7b4   :  { %v775_v36 = vsub.f32 1.5, %v774_v35 }
 0x7b6   :  { %v776_v37 = vmul.f32 %v1043_v32, %v775_v36 }
 0x7b8   :  { %v780_v39 = vsel %vm779_vm14, %v1043_v32, %v776_v37 }
 0x7b9   :  { %v791_v40 = vmul.f32 %v780_v39, %v757_v19 }
 0x7bb   :  { %v796_v42 = vmul.f32 %v1000_v38, %v791_v40 }
 0x7bd   :  { %v801_v43 = vadd.f32 %v1001_v41, %v796_v42 }
 0x7bf   :  { %975 = vmatmul.msk.f32.vlgmr.msrb.gmra.mxu0 %vm52_vm0, %v801_v43 }
 0x7c8   :  { %v766_v44 = vpop.xlane.xlu0 %765 }
 0x7c9   :  { %v768_v45 = vmul.f32 %v766_v44, %v1186_v10  ;;  %v897_v10 = vld [vmem:[%s1456_s12 + $0x78] sm:$0xff] }
 0x7ca   :  { %902 = vmatpush.msra.mxu3 %v897_v10 }
 0x7cb   :  { %v770_v46 = vadd.f32 1e-05, %v768_v45 }
 0x7cc   :  { %903 = vmatpush.msra.mxu3 %v896_v56 }
 0x7cd   :  { %1044 = vrsqrt.f32 %v770_v46  ;;  %vm787_vm1 = vweird.f32 %v770_v46 }
 0x7ce   :  { %904 = vmatpush.msra.mxu3 %v895_v58 }
 0x7d0   :  { %905 = vmatpush.msra.mxu3 %v894_v59 }
 0x7d2   :  { %906 = vmatpush.msra.mxu3 %v893_v60 }
 0x7d3   :  { %v1045_v47 = vpop.eup %1044 }
 0x7d4   :  { %v782_v48 = vmul.f32 %v1045_v47, %v770_v46  ;;  %vm788_vm15 = vweird.f32 %v1045_v47  ;;  %907 = vmatpush.msra.mxu3 %v892_v62  ;;  %v1003_v46 = vld [vmem:[%s1457_s13] ss:$0 sm:$0xff]  ;;  %s1096_s13 = smov 128  }
 0x7d5   :  { %vm789_vm2 = vmor %vm787_vm1, %vm788_vm15 }
 0x7d6   :  { %v783_v49 = vmul.f32 %v1045_v47, %v782_v48  ;;  %908 = vmatpush.msra.mxu3 %v891_v63 }
 0x7d8   :  { %v784_v28 = vmul.f32 0.5, %v783_v49  ;;  %909 = vmatpush.msra.mxu3 %v890_v1 }
 0x7da   :  { %v785_v50 = vsub.f32 1.5, %v784_v28  ;;  %910 = vmatpush.msra.mxu3 %v889_v3 }
 0x7dc   :  { %v786_v51 = vmul.f32 %v1045_v47, %v785_v50  ;;  %911 = vmatpush.msra.mxu3 %v888_v4 }
 0x7de   :  { %v790_v52 = vsel %vm789_vm2, %v1045_v47, %v786_v51  ;;  %912 = vmatpush.msra.mxu3 %v887_v5 }
 0x7df   :  { %v792_v27 = vmul.f32 %v790_v52, %v758_v23 }
 0x7e0   :  { %913 = vmatpush.msra.mxu3 %v886_v55 }
 0x7e1   :  { %v797_v53 = vmul.f32 %v1000_v38, %v792_v27 }
 0x7e2   :  { %914 = vmatpush.msra.mxu3 %v885_v57 }
 0x7e3   :  { %v802_v54 = vadd.f32 %v1001_v41, %v797_v53 }
 0x7e4   :  { %915 = vmatpush.msra.mxu3 %v884_v61 }
 0x7e5   :  { %976 = vmatmul.msk.f32.gmra.mxu0 %vm52_vm0, %v802_v54 }
 0x7e6   :  { %916 = vmatpush.msra.mxu3 %v883_v11 }
 0x7e8   :  { %917 = vmatpush.msra.mxu3 %v882_v13 }
 0x83c   :  { %v834_v7 = vpop.f32.mrf.mxu0 }
 0x83d   :  { %v835_v12 = vadd.f32 %v1002_v6, %v834_v7 }
 0x83f   :  { %v977_v16 = vmul.f32 -1.702, %v835_v12 }
 0x841   :  { %v844_v17 = vmul.f32 1.442695, %v977_v16 }
 0x843   :  { %1046 = vpow2.f32 %v844_v17 }
 0x849   :  { %v1047_v18 = vpop.eup %1046 }
 0x84a   :  { %v848_v19 = vadd.f32 1.0, %v1047_v18 }
 0x84c   :  { %1048 = vrcp.f32 %v848_v19  ;;  %v861_v22 = vand.u32 2147483648, %v848_v19  ;;  %v859_v2 = vand.u32 2147483647, %v848_v19  ;;  %vm855_vm4 = vweird.f32 %v848_v19 }
 0x84e   :  { %v862_v25 = vor.u32 1.1754944e-38, %v861_v22  ;;  %vm860_vm6 = vcmp.eq.f32.partialorder %v859_v2, 8.507059e+37 }
 0x852   :  { %v1049_v0 = vpop.eup %1048 }
 0x853   :  { %v851_v20 = vmul.f32 %v1049_v0, %v848_v19  ;;  %vm856_vm3 = vweird.f32 %v1049_v0 }
 0x854   :  { %vm857_vm5 = vmor %vm855_vm4, %vm856_vm3 }
 0x855   :  { %v852_v21 = vsub.f32 1.0, %v851_v20 }
 0x857   :  { %v853_v23 = vmul.f32 %v1049_v0, %v852_v21 }
 0x859   :  { %v854_v24 = vadd.f32 %v1049_v0, %v853_v23 }
 0x85b   :  { %v858_v26 = vsel %vm857_vm5, %v1049_v0, %v854_v24 }
 0x85c   :  { %v863_v15 = vsel %vm860_vm6, %v862_v25, %v858_v26 }
 0x85d   :  { %v880_v29 = vmul.f32 %v863_v15, %v835_v12 }
 0x85f   :  { %918 = vmatmul.f32.vlgmr.msra.gmra.mxu3 %v880_v29 }
 0x862   :  { %v837_v30 = vpop.f32.mrf.mxu0 }
 0x863   :  { %v838_v31 = vadd.f32 %v1002_v6, %v837_v30 }
 0x865   :  { %v978_v9 = vmul.f32 -1.702, %v838_v31 }
 0x867   :  { %v846_v32 = vmul.f32 1.442695, %v978_v9 }
 0x869   :  { %1050 = vpow2.f32 %v846_v32 }
 0x86f   :  { %v1051_v33 = vpop.eup %1050 }
 0x870   :  { %v849_v34 = vadd.f32 1.0, %v1051_v33 }
 0x872   :  { %1052 = vrcp.f32 %v849_v34  ;;  %v876_v38 = vand.u32 2147483648, %v849_v34  ;;  %v874_v40 = vand.u32 2147483647, %v849_v34  ;;  %vm870_vm8 = vweird.f32 %v849_v34 }
 0x874   :  { %v877_v42 = vor.u32 1.1754944e-38, %v876_v38  ;;  %vm875_vm10 = vcmp.eq.f32.partialorder %v874_v40, 8.507059e+37 }
 0x878   :  { %v1053_v35 = vpop.eup %1052 }
 0x879   :  { %v866_v36 = vmul.f32 %v1053_v35, %v849_v34  ;;  %vm871_vm7 = vweird.f32 %v1053_v35 }
 0x87a   :  { %vm872_vm9 = vmor %vm870_vm8, %vm871_vm7 }
 0x87b   :  { %v867_v37 = vsub.f32 1.0, %v866_v36 }
 0x87d   :  { %v868_v39 = vmul.f32 %v1053_v35, %v867_v37 }
 0x87f   :  { %v869_v41 = vadd.f32 %v1053_v35, %v868_v39 }
 0x881   :  { %v873_v43 = vsel %vm872_vm9, %v1053_v35, %v869_v41 }
 0x882   :  { %v878_v44 = vsel %vm875_vm10, %v877_v42, %v873_v43 }
 0x883   :  { %v881_v45 = vmul.f32 %v878_v44, %v838_v31 }
 0x885   :  { %921 = vmatmul.f32.gmra.mxu3 %v881_v45 }
 0x8e2   :  { %v919_v47 = vpop.f32.mrf.mxu3 }
 0x8e3   :  { %v920_v48 = vadd.f32 %v1003_v46, %v919_v47 }
 0x8e5   :  { %v925_v49 = vadd.f32 %v920_v48, %v1345_v8 }
 0x8e7   :  { %927 = vst.msk [vmem:[#allocation3] sm:$0xff] %vm52_vm0, %v925_v49 }
 0x908   :  { %v922_v28 = vpop.f32.mrf.mxu3 }
 0x909   :  { %v923_v50 = vadd.f32 %v1003_v46, %v922_v28 }
 0x90b   :  { %v926_v51 = vadd.f32 %v923_v50, %v1350_v14 }
 0x90d   :  { %928 = vst.msk [vmem:[#allocation3 + $0x8] sm:$0xff] %vm52_vm0, %v926_v51 }
 0x90e   :  { %941 = dma.vmem_to_hbm [thread:$0]  %s934_s6, 256, %s936_s3, [#allocation4], %s1096_s13, %s1096_s13, %s1092_s21  }
 0x90f   :  { %1078 = dma.done.wait [#allocation4], 256  }
 0x910   :  { %1079 = vsyncadd [#allocation4], 4294967040 }
 0x911   :  { %946 = vsyncpa [#allocation4], 1 }

</bundles_post_ra>
